<compile_context>
chip_gen: v6e
topology: v6e:2x2x1
jax: 0.10.0
libtpu: 0.0.40
codegen_flags: <defaults>
</compile_context>

<pallas_src>
import jax
import jax.numpy as jnp
from jax.experimental import pallas as pl
from jax.experimental.pallas import tpu as pltpu  # noqa: F401  (TPU backend)


# ---------------------------------------------------------------------------
# Pallas kernels
# ---------------------------------------------------------------------------

def _gcn_kernel(g_ref, h_ref, w_ref, b_ref, o_ref):
    # h' = relu( (g @ h) @ W + b )
    gh = jnp.dot(g_ref[...], h_ref[...], preferred_element_type=jnp.float32)
    z = jnp.dot(gh, w_ref[...], preferred_element_type=jnp.float32) + b_ref[...]
    o_ref[...] = jnp.maximum(z, 0.0).astype(o_ref.dtype)


def gcn_forward(g, h, w, b):
    N = g.shape[0]
    d_in = h.shape[1]
    d_out = w.shape[1]
    return pl.pallas_call(
        _gcn_kernel,
        out_shape=jax.ShapeDtypeStruct((N, d_out), jnp.float32),
        grid=(1,),
        in_specs=[
            pl.BlockSpec((N, N), lambda i: (0, 0)),
            pl.BlockSpec((N, d_in), lambda i: (0, 0)),
            pl.BlockSpec((d_in, d_out), lambda i: (0, 0)),
            pl.BlockSpec((1, d_out), lambda i: (0, 0)),
        ],
        out_specs=pl.BlockSpec((N, d_out), lambda i: (0, 0)),
    )(g, h, w, b.reshape(1, d_out))


def _gcn_pool_kernel(g_ref, h_ref, w_ref, b_ref, pw_ref, pb_ref, h_out_ref, s_out_ref):
    # Down-level fusion: GCN + pool score in one kernel; h' stays resident in vregs.
    gh = jnp.dot(g_ref[...], h_ref[...], preferred_element_type=jnp.float32)
    z = jnp.dot(gh, w_ref[...], preferred_element_type=jnp.float32) + b_ref[...]
    h_new = jnp.maximum(z, 0.0)
    h_out_ref[...] = h_new.astype(h_out_ref.dtype)
    # Pool scores via a VPU reduction (not a (D,1) MXU matmul); stored lane-dense (1, N).
    s = jnp.sum(h_new * pw_ref[...], axis=-1)[None, :]          # (1, N)
    s_out_ref[...] = jax.nn.sigmoid(s + pb_ref[...]).astype(s_out_ref.dtype)


def gcn_pool_forward(g, h, w, b, pw, pb):
    N = g.shape[0]
    d_in = h.shape[1]
    d_out = w.shape[1]
    h_new, scores = pl.pallas_call(
        _gcn_pool_kernel,
        out_shape=(
            jax.ShapeDtypeStruct((N, d_out), jnp.float32),
            jax.ShapeDtypeStruct((1, N), jnp.float32),
        ),
        grid=(1,),
        in_specs=[
            pl.BlockSpec((N, N), lambda i: (0, 0)),
            pl.BlockSpec((N, d_in), lambda i: (0, 0)),
            pl.BlockSpec((d_in, d_out), lambda i: (0, 0)),
            pl.BlockSpec((1, d_out), lambda i: (0, 0)),
            pl.BlockSpec((1, d_out), lambda i: (0, 0)),
            pl.BlockSpec((1, 1), lambda i: (0, 0)),
        ],
        out_specs=(
            pl.BlockSpec((N, d_out), lambda i: (0, 0)),
            pl.BlockSpec((1, N), lambda i: (0, 0)),
        ),
    )(g, h, w, b.reshape(1, d_out), pw.reshape(1, d_out), pb.reshape(1, 1))
    return h_new, scores[0]  # scores -> (N,)


def _gcn_res_kernel(g_ref, h_ref, w_ref, b_ref, r_ref, o_ref):
    # Up-level fusion: (unpooled) GCN + skip-connection add.
    gh = jnp.dot(g_ref[...], h_ref[...], preferred_element_type=jnp.float32)
    z = jnp.dot(gh, w_ref[...], preferred_element_type=jnp.float32) + b_ref[...]
    o_ref[...] = (jnp.maximum(z, 0.0) + r_ref[...]).astype(o_ref.dtype)


def gcn_unpool_res_forward(g_cols, h, w, b, res):
    # relu( (g[:, idx] @ h) @ W + b ) + res   == GCN(g, scatter(h, idx)) + res
    N, kk = g_cols.shape
    d_in = h.shape[1]
    d_out = w.shape[1]
    return pl.pallas_call(
        _gcn_res_kernel,
        out_shape=jax.ShapeDtypeStruct((N, d_out), jnp.float32),
        grid=(1,),
        in_specs=[
            pl.BlockSpec((N, kk), lambda i: (0, 0)),
            pl.BlockSpec((kk, d_in), lambda i: (0, 0)),
            pl.BlockSpec((d_in, d_out), lambda i: (0, 0)),
            pl.BlockSpec((1, d_out), lambda i: (0, 0)),
            pl.BlockSpec((N, d_out), lambda i: (0, 0)),
        ],
        out_specs=pl.BlockSpec((N, d_out), lambda i: (0, 0)),
    )(g_cols, h, w, b.reshape(1, d_out), res)


def _adj_pool_kernel(gr_ref, gc_ref, o_ref):
    # Pooled 2-hop boolean adjacency: bool( bool(g)[idx,:] @ bool(g)[:,idx] ).
    # 0/1 values are exact in bf16; f32 accumulation; only the !=0 test is used.
    a = (gr_ref[...] != 0).astype(jnp.bfloat16)   # (kk, N)
    c = (gc_ref[...] != 0).astype(jnp.bfloat16)   # (N, kk)
    m = jnp.dot(a, c, preferred_element_type=jnp.float32)
    o_ref[...] = (m != 0).astype(jnp.float32)


def adj_pool(g, idx):
    # (bool(g) @ bool(g))[idx][:, idx] == bool(g)[idx, :] @ bool(g)[:, idx]
    # -> kk*kk*N FLOPs instead of N^3, no full (N, N) un_g round trip.
    N = g.shape[0]
    kk = idx.shape[0]
    g_rows = g[idx, :]   # (kk, N)   gather, fused by XLA under jit
    g_cols = g[:, idx]   # (N, kk)
    return pl.pallas_call(
        _adj_pool_kernel,
        out_shape=jax.ShapeDtypeStruct((kk, kk), jnp.float32),
        grid=(1,),
        in_specs=[
            pl.BlockSpec((kk, N), lambda i: (0, 0)),
            pl.BlockSpec((N, kk), lambda i: (0, 0)),
        ],
        out_specs=pl.BlockSpec((kk, kk), lambda i: (0, 0)),
    )(g_rows, g_cols)


# ---------------------------------------------------------------------------
# Glue (plain JAX, runs fused under jax.jit) — reproduces torch semantics
# ---------------------------------------------------------------------------

def norm_g(g):
    # torch: degrees = sum(g, 1); g = g / degrees
    # NOTE: this broadcasts degrees over the LAST dim (scales columns, not rows) —
    # faithful reproduction of the PyTorch GUNet quirk; do not "fix".
    degrees = jnp.sum(g, axis=1)
    # Guard against zero-degree nodes (torch would produce inf/NaN there).
    safe = jnp.where(degrees != 0, degrees, 1.0)
    return g / safe


def top_k_graph(scores, g, h, k):
    num_nodes = g.shape[0]
    kk = max(2, int(k * num_nodes))
    values, idx = jax.lax.top_k(scores, kk)          # descending, like torch.topk
    new_h = h[idx, :] * values[:, None]              # gate selected node features
    un_g = adj_pool(g, idx)                          # Pallas: pooled 2-hop adjacency
    g_new = norm_g(un_g)
    return g_new, new_h, idx


# ---------------------------------------------------------------------------
# Parameters (deterministic init, PyTorch Linear-like uniform bounds)
# ---------------------------------------------------------------------------

def init_linear(key, in_dim, out_dim):
    kw, kb = jax.random.split(key)
    bound = 1.0 / (in_dim ** 0.5)
    w = jax.random.uniform(kw, (in_dim, out_dim), jnp.float32, -bound, bound)
    b = jax.random.uniform(kb, (out_dim,), jnp.float32, -bound, bound)
    return w, b


def init_graph_unet_params(key, ks, dim):
    l_n = len(ks)
    keys = jax.random.split(key, 3 * l_n + 1)
    return {
        "bottom": init_linear(keys[0], dim, dim),
        "down": [init_linear(keys[1 + i], dim, dim) for i in range(l_n)],
        "up": [init_linear(keys[1 + l_n + i], dim, dim) for i in range(l_n)],
        "pool": [init_linear(keys[1 + 2 * l_n + i], dim, 1) for i in range(l_n)],
    }


# ---------------------------------------------------------------------------
# GraphUnet forward (act = ReLU, drop_p = 0.0 -> Identity)
# ---------------------------------------------------------------------------

def graph_unet_forward(params, ks, g, h):
    l_n = len(ks)
    adj_ms, indices_list, down_outs, hs = [], [], [], []
    org_h = h
    # down path
    for i in range(l_n):
        w, b = params["down"][i]
        pw, pb = params["pool"][i]
        h, scores = gcn_pool_forward(g, h, w, b, pw, pb)   # fused GCN + pool scores
        adj_ms.append(g)
        down_outs.append(h)
        g, h, idx = top_k_graph(scores, g, h, ks[i])
        indices_list.append(idx)
    # bottom
    bw, bb = params["bottom"]
    h = gcn_forward(g, h, bw, bb)
    # up path
    for i in range(l_n):
        up_idx = l_n - i - 1
        g_full, idx = adj_ms[up_idx], indices_list[up_idx]
        uw, ub = params["up"][i]
        # Unpool + GCN + skip-add fused: g @ scatter(h, idx) == g[:, idx] @ h (exact).
        h = gcn_unpool_res_forward(g_full[:, idx], h, uw, ub, down_outs[up_idx])
        hs.append(h)
    h = h + org_h
    hs.append(h)
    return hs


# ---------------------------------------------------------------------------

if __name__ == "__main__":
    key = jax.random.PRNGKey(0)
    k_g, k_h, k_p = jax.random.split(key, 3)

    N, dim = 16, 32
    ks = (0.9, 0.7)          # pooling ratios -> node counts 16 -> 14 -> 9

    # deterministic symmetric adjacency with self-loops, then normalized
    A = (jax.random.uniform(k_g, (N, N)) > 0.6).astype(jnp.float32)
    A = jnp.maximum(A, A.T) + jnp.eye(N, dtype=jnp.float32)
    g = norm_g(A)
    h = jax.random.normal(k_h, (N, dim), jnp.float32)

    params = init_graph_unet_params(k_p, ks, dim)

    # Whole forward is jitted: all Pallas calls + glue (top_k, gathers, adds) compile once.
    fwd = jax.jit(lambda p, g_, h_: graph_unet_forward(p, ks, g_, h_))
    hs = jax.block_until_ready(fwd(params, g, h))

    # Expected node count per output: up-path outputs live on the pre-pool graphs
    # (deepest first), then the final residual output on the original graph.
    l_n = len(ks)
    sizes = [N]
    for k in ks:
        sizes.append(max(2, int(k * sizes[-1])))
    expected_nodes = [sizes[l_n - 1 - i] for i in range(l_n)] + [N]

    assert len(hs) == l_n + 1
    for out, n_nodes in zip(hs, expected_nodes):
        assert out.shape == (n_nodes, dim), (out.shape, (n_nodes, dim))
        assert bool(jnp.all(jnp.isfinite(out)))

    print("KERNEL_OK")
</pallas_src>

<mosaic_0001>
module attributes {stable_mosaic.version = 11 : i64} {
  func.func @_gcn_pool_kernel(%arg0: i32, %arg1: memref<16x16xf32, #tpu.memory_space<vmem>>, %arg2: memref<16x32xf32, #tpu.memory_space<vmem>>, %arg3: memref<32x32xf32, #tpu.memory_space<vmem>>, %arg4: memref<1x32xf32, #tpu.memory_space<vmem>>, %arg5: memref<1x32xf32, #tpu.memory_space<vmem>>, %arg6: memref<1x1xf32, #tpu.memory_space<vmem>>, %arg7: memref<16x32xf32, #tpu.memory_space<vmem>>, %arg8: memref<1x16xf32, #tpu.memory_space<vmem>>) attributes {dimension_semantics = [#tpu.dimension_semantics<arbitrary>], iteration_bounds = array<i64: 1>, scalar_prefetch = 0 : i64, scratch_operands = 0 : i64, tpu.core_type = #tpu.core_type<tc>, window_params = [{pipeline_mode = #tpu.pipeline_mode<synchronous>, transform_indices = @transform_0, window_bounds = array<i64: 16, 16>}, {pipeline_mode = #tpu.pipeline_mode<synchronous>, transform_indices = @transform_1, window_bounds = array<i64: 16, 32>}, {pipeline_mode = #tpu.pipeline_mode<synchronous>, transform_indices = @transform_2, window_bounds = array<i64: 32, 32>}, {pipeline_mode = #tpu.pipeline_mode<synchronous>, transform_indices = @transform_3, window_bounds = array<i64: 1, 32>}, {pipeline_mode = #tpu.pipeline_mode<synchronous>, transform_indices = @transform_4, window_bounds = array<i64: 1, 32>}, {pipeline_mode = #tpu.pipeline_mode<synchronous>, transform_indices = @transform_5, window_bounds = array<i64: 1, 1>}, {pipeline_mode = #tpu.pipeline_mode<synchronous>, transform_indices = @transform_6, window_bounds = array<i64: 16, 32>}, {pipeline_mode = #tpu.pipeline_mode<synchronous>, transform_indices = @transform_7, window_bounds = array<i64: 1, 16>}]} {
    %c0 = arith.constant 0 : index
    %c0_0 = arith.constant 0 : index
    %0 = vector.load %arg1[%c0, %c0_0] : memref<16x16xf32, #tpu.memory_space<vmem>>, vector<16x16xf32>
    %c0_1 = arith.constant 0 : index
    %c0_2 = arith.constant 0 : index
    %1 = vector.load %arg2[%c0_1, %c0_2] : memref<16x32xf32, #tpu.memory_space<vmem>>, vector<16x32xf32>
    %cst = arith.constant dense<0.000000e+00> : vector<16x32xf32>
    %2 = tpu.matmul %0, %1, %cst {dimension_numbers = #tpu.dot_dimension_numbers<[1], [0], [0], [1], [0, 0, 1, 1], [], []>} : vector<16x16xf32>, vector<16x32xf32>, vector<16x32xf32> -> vector<16x32xf32>
    %c0_3 = arith.constant 0 : index
    %c0_4 = arith.constant 0 : index
    %3 = vector.load %arg3[%c0_3, %c0_4] : memref<32x32xf32, #tpu.memory_space<vmem>>, vector<32x32xf32>
    %cst_5 = arith.constant dense<0.000000e+00> : vector<16x32xf32>
    %4 = tpu.matmul %2, %3, %cst_5 {dimension_numbers = #tpu.dot_dimension_numbers<[1], [0], [0], [1], [0, 0, 1, 1], [], []>} : vector<16x32xf32>, vector<32x32xf32>, vector<16x32xf32> -> vector<16x32xf32>
    %c0_6 = arith.constant 0 : index
    %c0_7 = arith.constant 0 : index
    %5 = vector.load %arg4[%c0_6, %c0_7] : memref<1x32xf32, #tpu.memory_space<vmem>>, vector<1x32xf32>
    %6 = vector.broadcast %5 : vector<1x32xf32> to vector<16x32xf32>
    %7 = arith.addf %4, %6 : vector<16x32xf32>
    %cst_8 = arith.constant 0.000000e+00 : f32
    %8 = vector.broadcast %cst_8 : f32 to vector<16x32xf32>
    %9 = arith.maximumf %7, %8 : vector<16x32xf32>
    %c0_9 = arith.constant 0 : index
    %c0_10 = arith.constant 0 : index
    %10 = vector.load %arg7[%c0_9, %c0_10] : memref<16x32xf32, #tpu.memory_space<vmem>>, vector<16x32xf32>
    tpu.vector_store %arg7[%c0_9, %c0_10], %9 {strides = array<i32>} : memref<16x32xf32, #tpu.memory_space<vmem>>, vector<16x32xf32>,
    %c0_11 = arith.constant 0 : index
    %c0_12 = arith.constant 0 : index
    %11 = vector.load %arg5[%c0_11, %c0_12] : memref<1x32xf32, #tpu.memory_space<vmem>>, vector<1x32xf32>
    %12 = vector.broadcast %11 : vector<1x32xf32> to vector<16x32xf32>
    %13 = arith.mulf %9, %12 : vector<16x32xf32>
    %cst_13 = arith.constant dense<0.000000e+00> : vector<16xf32>
    %14 = vector.multi_reduction <add>, %13, %cst_13 [1] : vector<16x32xf32> to vector<16xf32>
    %15 = vector.shape_cast %14 : vector<16xf32> to vector<1x16xf32>
    %c0_14 = arith.constant 0 : index
    %c0_15 = arith.constant 0 : index
    %16 = vector.load %arg6[%c0_14, %c0_15] : memref<1x1xf32, #tpu.memory_space<vmem>>, vector<1x1xf32>
    %17 = vector.broadcast %16 : vector<1x1xf32> to vector<1x16xf32>
    %18 = arith.addf %15, %17 : vector<1x16xf32>
    %19 = arith.negf %18 : vector<1x16xf32>
    %20 = math.exp %19 : vector<1x16xf32>
    %cst_16 = arith.constant 1.000000e+00 : f32
    %21 = vector.broadcast %cst_16 : f32 to vector<1x16xf32>
    %22 = arith.addf %21, %20 : vector<1x16xf32>
    %23 = arith.divf %21, %22 : vector<1x16xf32>
    %c0_17 = arith.constant 0 : index
    %c0_18 = arith.constant 0 : index
    %24 = vector.load %arg8[%c0_17, %c0_18] : memref<1x16xf32, #tpu.memory_space<vmem>>, vector<1x16xf32>
    tpu.vector_store %arg8[%c0_17, %c0_18], %23 {strides = array<i32>} : memref<1x16xf32, #tpu.memory_space<vmem>>, vector<1x16xf32>,
    return
  }
  func.func @transform_0(%arg0: i32) -> (i32, i32) {
    %c0_i32 = arith.constant 0 : i32
    %c0_i32_0 = arith.constant 0 : i32
    %c0_i32_1 = arith.constant 0 : i32
    return %c0_i32, %c0_i32_0 : i32, i32
  }
  func.func @transform_1(%arg0: i32) -> (i32, i32) {
    %c0_i32 = arith.constant 0 : i32
    %c0_i32_0 = arith.constant 0 : i32
    %c0_i32_1 = arith.constant 0 : i32
    return %c0_i32, %c0_i32_0 : i32, i32
  }
  func.func @transform_2(%arg0: i32) -> (i32, i32) {
    %c0_i32 = arith.constant 0 : i32
    %c0_i32_0 = arith.constant 0 : i32
    %c0_i32_1 = arith.constant 0 : i32
    return %c0_i32, %c0_i32_0 : i32, i32
  }
  func.func @transform_3(%arg0: i32) -> (i32, i32) {
    %c0_i32 = arith.constant 0 : i32
    %c0_i32_0 = arith.constant 0 : i32
    %c0_i32_1 = arith.constant 0 : i32
    return %c0_i32, %c0_i32_0 : i32, i32
  }
  func.func @transform_4(%arg0: i32) -> (i32, i32) {
    %c0_i32 = arith.constant 0 : i32
    %c0_i32_0 = arith.constant 0 : i32
    %c0_i32_1 = arith.constant 0 : i32
    return %c0_i32, %c0_i32_0 : i32, i32
  }
  func.func @transform_5(%arg0: i32) -> (i32, i32) {
    %c0_i32 = arith.constant 0 : i32
    %c0_i32_0 = arith.constant 0 : i32
    %c0_i32_1 = arith.constant 0 : i32
    return %c0_i32, %c0_i32_0 : i32, i32
  }
  func.func @transform_6(%arg0: i32) -> (i32, i32) {
    %c0_i32 = arith.constant 0 : i32
    %c0_i32_0 = arith.constant 0 : i32
    %c0_i32_1 = arith.constant 0 : i32
    return %c0_i32, %c0_i32_0 : i32, i32
  }
  func.func @transform_7(%arg0: i32) -> (i32, i32) {
    %c0_i32 = arith.constant 0 : i32
    %c0_i32_0 = arith.constant 0 : i32
    %c0_i32_1 = arith.constant 0 : i32
    return %c0_i32, %c0_i32_0 : i32, i32
  }
}

module attributes {stable_mosaic.version = 11 : i64} {
  func.func @_adj_pool_kernel(%arg0: i32, %arg1: memref<14x16xf32, #tpu.memory_space<vmem>>, %arg2: memref<16x14xf32, #tpu.memory_space<vmem>>, %arg3: memref<14x14xf32, #tpu.memory_space<vmem>>) attributes {dimension_semantics = [#tpu.dimension_semantics<arbitrary>], iteration_bounds = array<i64: 1>, scalar_prefetch = 0 : i64, scratch_operands = 0 : i64, tpu.core_type = #tpu.core_type<tc>, window_params = [{pipeline_mode = #tpu.pipeline_mode<synchronous>, transform_indices = @transform_0, window_bounds = array<i64: 14, 16>}, {pipeline_mode = #tpu.pipeline_mode<synchronous>, transform_indices = @transform_1, window_bounds = array<i64: 16, 14>}, {pipeline_mode = #tpu.pipeline_mode<synchronous>, transform_indices = @transform_2, window_bounds = array<i64: 14, 14>}]} {
    %c0 = arith.constant 0 : index
    %c0_0 = arith.constant 0 : index
    %0 = vector.load %arg1[%c0, %c0_0] : memref<14x16xf32, #tpu.memory_space<vmem>>, vector<14x16xf32>
    %cst = arith.constant 0.000000e+00 : f32
    %1 = vector.broadcast %cst : f32 to vector<14x16xf32>
    %2 = arith.cmpf one, %0, %1 : vector<14x16xf32>
    %3 = arith.extui %2 : vector<14x16xi1> to vector<14x16xi32>
    %4 = arith.sitofp %3 : vector<14x16xi32> to vector<14x16xf32>
    %5 = arith.truncf %4 : vector<14x16xf32> to vector<14x16xbf16>
    %c0_1 = arith.constant 0 : index
    %c0_2 = arith.constant 0 : index
    %6 = vector.load %arg2[%c0_1, %c0_2] : memref<16x14xf32, #tpu.memory_space<vmem>>, vector<16x14xf32>
    %cst_3 = arith.constant 0.000000e+00 : f32
    %7 = vector.broadcast %cst_3 : f32 to vector<16x14xf32>
    %8 = arith.cmpf one, %6, %7 : vector<16x14xf32>
    %9 = arith.extui %8 : vector<16x14xi1> to vector<16x14xi32>
    %10 = arith.sitofp %9 : vector<16x14xi32> to vector<16x14xf32>
    %11 = arith.truncf %10 : vector<16x14xf32> to vector<16x14xbf16>
    %cst_4 = arith.constant dense<0.000000e+00> : vector<14x14xf32>
    %12 = tpu.matmul %5, %11, %cst_4 {dimension_numbers = #tpu.dot_dimension_numbers<[1], [0], [0], [1], [0, 0, 1, 1], [], []>} : vector<14x16xbf16>, vector<16x14xbf16>, vector<14x14xf32> -> vector<14x14xf32>
    %cst_5 = arith.constant 0.000000e+00 : f32
    %13 = vector.broadcast %cst_5 : f32 to vector<14x14xf32>
    %14 = arith.cmpf one, %12, %13 : vector<14x14xf32>
    %15 = arith.extui %14 : vector<14x14xi1> to vector<14x14xi32>
    %16 = arith.sitofp %15 : vector<14x14xi32> to vector<14x14xf32>
    %c0_6 = arith.constant 0 : index
    %c0_7 = arith.constant 0 : index
    %17 = vector.load %arg3[%c0_6, %c0_7] : memref<14x14xf32, #tpu.memory_space<vmem>>, vector<14x14xf32>
    tpu.vector_store %arg3[%c0_6, %c0_7], %16 {strides = array<i32>} : memref<14x14xf32, #tpu.memory_space<vmem>>, vector<14x14xf32>,
    return
  }
  func.func @transform_0(%arg0: i32) -> (i32, i32) {
    %c0_i32 = arith.constant 0 : i32
    %c0_i32_0 = arith.constant 0 : i32
    %c0_i32_1 = arith.constant 0 : i32
    return %c0_i32, %c0_i32_0 : i32, i32
  }
  func.func @transform_1(%arg0: i32) -> (i32, i32) {
    %c0_i32 = arith.constant 0 : i32
    %c0_i32_0 = arith.constant 0 : i32
    %c0_i32_1 = arith.constant 0 : i32
    return %c0_i32, %c0_i32_0 : i32, i32
  }
  func.func @transform_2(%arg0: i32) -> (i32, i32) {
    %c0_i32 = arith.constant 0 : i32
    %c0_i32_0 = arith.constant 0 : i32
    %c0_i32_1 = arith.constant 0 : i32
    return %c0_i32, %c0_i32_0 : i32, i32
  }
}

module attributes {stable_mosaic.version = 11 : i64} {
  func.func @_gcn_pool_kernel(%arg0: i32, %arg1: memref<14x14xf32, #tpu.memory_space<vmem>>, %arg2: memref<14x32xf32, #tpu.memory_space<vmem>>, %arg3: memref<32x32xf32, #tpu.memory_space<vmem>>, %arg4: memref<1x32xf32, #tpu.memory_space<vmem>>, %arg5: memref<1x32xf32, #tpu.memory_space<vmem>>, %arg6: memref<1x1xf32, #tpu.memory_space<vmem>>, %arg7: memref<14x32xf32, #tpu.memory_space<vmem>>, %arg8: memref<1x14xf32, #tpu.memory_space<vmem>>) attributes {dimension_semantics = [#tpu.dimension_semantics<arbitrary>], iteration_bounds = array<i64: 1>, scalar_prefetch = 0 : i64, scratch_operands = 0 : i64, tpu.core_type = #tpu.core_type<tc>, window_params = [{pipeline_mode = #tpu.pipeline_mode<synchronous>, transform_indices = @transform_0, window_bounds = array<i64: 14, 14>}, {pipeline_mode = #tpu.pipeline_mode<synchronous>, transform_indices = @transform_1, window_bounds = array<i64: 14, 32>}, {pipeline_mode = #tpu.pipeline_mode<synchronous>, transform_indices = @transform_2, window_bounds = array<i64: 32, 32>}, {pipeline_mode = #tpu.pipeline_mode<synchronous>, transform_indices = @transform_3, window_bounds = array<i64: 1, 32>}, {pipeline_mode = #tpu.pipeline_mode<synchronous>, transform_indices = @transform_4, window_bounds = array<i64: 1, 32>}, {pipeline_mode = #tpu.pipeline_mode<synchronous>, transform_indices = @transform_5, window_bounds = array<i64: 1, 1>}, {pipeline_mode = #tpu.pipeline_mode<synchronous>, transform_indices = @transform_6, window_bounds = array<i64: 14, 32>}, {pipeline_mode = #tpu.pipeline_mode<synchronous>, transform_indices = @transform_7, window_bounds = array<i64: 1, 14>}]} {
    %c0 = arith.constant 0 : index
    %c0_0 = arith.constant 0 : index
    %0 = vector.load %arg1[%c0, %c0_0] : memref<14x14xf32, #tpu.memory_space<vmem>>, vector<14x14xf32>
    %c0_1 = arith.constant 0 : index
    %c0_2 = arith.constant 0 : index
    %1 = vector.load %arg2[%c0_1, %c0_2] : memref<14x32xf32, #tpu.memory_space<vmem>>, vector<14x32xf32>
    %cst = arith.constant dense<0.000000e+00> : vector<14x32xf32>
    %2 = tpu.matmul %0, %1, %cst {dimension_numbers = #tpu.dot_dimension_numbers<[1], [0], [0], [1], [0, 0, 1, 1], [], []>} : vector<14x14xf32>, vector<14x32xf32>, vector<14x32xf32> -> vector<14x32xf32>
    %c0_3 = arith.constant 0 : index
    %c0_4 = arith.constant 0 : index
    %3 = vector.load %arg3[%c0_3, %c0_4] : memref<32x32xf32, #tpu.memory_space<vmem>>, vector<32x32xf32>
    %cst_5 = arith.constant dense<0.000000e+00> : vector<14x32xf32>
    %4 = tpu.matmul %2, %3, %cst_5 {dimension_numbers = #tpu.dot_dimension_numbers<[1], [0], [0], [1], [0, 0, 1, 1], [], []>} : vector<14x32xf32>, vector<32x32xf32>, vector<14x32xf32> -> vector<14x32xf32>
    %c0_6 = arith.constant 0 : index
    %c0_7 = arith.constant 0 : index
    %5 = vector.load %arg4[%c0_6, %c0_7] : memref<1x32xf32, #tpu.memory_space<vmem>>, vector<1x32xf32>
    %6 = vector.broadcast %5 : vector<1x32xf32> to vector<14x32xf32>
    %7 = arith.addf %4, %6 : vector<14x32xf32>
    %cst_8 = arith.constant 0.000000e+00 : f32
    %8 = vector.broadcast %cst_8 : f32 to vector<14x32xf32>
    %9 = arith.maximumf %7, %8 : vector<14x32xf32>
    %c0_9 = arith.constant 0 : index
    %c0_10 = arith.constant 0 : index
    %10 = vector.load %arg7[%c0_9, %c0_10] : memref<14x32xf32, #tpu.memory_space<vmem>>, vector<14x32xf32>
    tpu.vector_store %arg7[%c0_9, %c0_10], %9 {strides = array<i32>} : memref<14x32xf32, #tpu.memory_space<vmem>>, vector<14x32xf32>,
    %c0_11 = arith.constant 0 : index
    %c0_12 = arith.constant 0 : index
    %11 = vector.load %arg5[%c0_11, %c0_12] : memref<1x32xf32, #tpu.memory_space<vmem>>, vector<1x32xf32>
    %12 = vector.broadcast %11 : vector<1x32xf32> to vector<14x32xf32>
    %13 = arith.mulf %9, %12 : vector<14x32xf32>
    %cst_13 = arith.constant dense<0.000000e+00> : vector<14xf32>
    %14 = vector.multi_reduction <add>, %13, %cst_13 [1] : vector<14x32xf32> to vector<14xf32>
    %15 = vector.shape_cast %14 : vector<14xf32> to vector<1x14xf32>
    %c0_14 = arith.constant 0 : index
    %c0_15 = arith.constant 0 : index
    %16 = vector.load %arg6[%c0_14, %c0_15] : memref<1x1xf32, #tpu.memory_space<vmem>>, vector<1x1xf32>
    %17 = vector.broadcast %16 : vector<1x1xf32> to vector<1x14xf32>
    %18 = arith.addf %15, %17 : vector<1x14xf32>
    %19 = arith.negf %18 : vector<1x14xf32>
    %20 = math.exp %19 : vector<1x14xf32>
    %cst_16 = arith.constant 1.000000e+00 : f32
    %21 = vector.broadcast %cst_16 : f32 to vector<1x14xf32>
    %22 = arith.addf %21, %20 : vector<1x14xf32>
    %23 = arith.divf %21, %22 : vector<1x14xf32>
    %c0_17 = arith.constant 0 : index
    %c0_18 = arith.constant 0 : index
    %24 = vector.load %arg8[%c0_17, %c0_18] : memref<1x14xf32, #tpu.memory_space<vmem>>, vector<1x14xf32>
    tpu.vector_store %arg8[%c0_17, %c0_18], %23 {strides = array<i32>} : memref<1x14xf32, #tpu.memory_space<vmem>>, vector<1x14xf32>,
    return
  }
  func.func @transform_0(%arg0: i32) -> (i32, i32) {
    %c0_i32 = arith.constant 0 : i32
    %c0_i32_0 = arith.constant 0 : i32
    %c0_i32_1 = arith.constant 0 : i32
    return %c0_i32, %c0_i32_0 : i32, i32
  }
  func.func @transform_1(%arg0: i32) -> (i32, i32) {
    %c0_i32 = arith.constant 0 : i32
    %c0_i32_0 = arith.constant 0 : i32
    %c0_i32_1 = arith.constant 0 : i32
    return %c0_i32, %c0_i32_0 : i32, i32
  }
  func.func @transform_2(%arg0: i32) -> (i32, i32) {
    %c0_i32 = arith.constant 0 : i32
    %c0_i32_0 = arith.constant 0 : i32
    %c0_i32_1 = arith.constant 0 : i32
    return %c0_i32, %c0_i32_0 : i32, i32
  }
  func.func @transform_3(%arg0: i32) -> (i32, i32) {
    %c0_i32 = arith.constant 0 : i32
    %c0_i32_0 = arith.constant 0 : i32
    %c0_i32_1 = arith.constant 0 : i32
    return %c0_i32, %c0_i32_0 : i32, i32
  }
  func.func @transform_4(%arg0: i32) -> (i32, i32) {
    %c0_i32 = arith.constant 0 : i32
    %c0_i32_0 = arith.constant 0 : i32
    %c0_i32_1 = arith.constant 0 : i32
    return %c0_i32, %c0_i32_0 : i32, i32
  }
  func.func @transform_5(%arg0: i32) -> (i32, i32) {
    %c0_i32 = arith.constant 0 : i32
    %c0_i32_0 = arith.constant 0 : i32
    %c0_i32_1 = arith.constant 0 : i32
    return %c0_i32, %c0_i32_0 : i32, i32
  }
  func.func @transform_6(%arg0: i32) -> (i32, i32) {
    %c0_i32 = arith.constant 0 : i32
    %c0_i32_0 = arith.constant 0 : i32
    %c0_i32_1 = arith.constant 0 : i32
    return %c0_i32, %c0_i32_0 : i32, i32
  }
  func.func @transform_7(%arg0: i32) -> (i32, i32) {
    %c0_i32 = arith.constant 0 : i32
    %c0_i32_0 = arith.constant 0 : i32
    %c0_i32_1 = arith.constant 0 : i32
    return %c0_i32, %c0_i32_0 : i32, i32
  }
}

module attributes {stable_mosaic.version = 11 : i64} {
  func.func @_adj_pool_kernel(%arg0: i32, %arg1: memref<9x14xf32, #tpu.memory_space<vmem>>, %arg2: memref<14x9xf32, #tpu.memory_space<vmem>>, %arg3: memref<9x9xf32, #tpu.memory_space<vmem>>) attributes {dimension_semantics = [#tpu.dimension_semantics<arbitrary>], iteration_bounds = array<i64: 1>, scalar_prefetch = 0 : i64, scratch_operands = 0 : i64, tpu.core_type = #tpu.core_type<tc>, window_params = [{pipeline_mode = #tpu.pipeline_mode<synchronous>, transform_indices = @transform_0, window_bounds = array<i64: 9, 14>}, {pipeline_mode = #tpu.pipeline_mode<synchronous>, transform_indices = @transform_1, window_bounds = array<i64: 14, 9>}, {pipeline_mode = #tpu.pipeline_mode<synchronous>, transform_indices = @transform_2, window_bounds = array<i64: 9, 9>}]} {
    %c0 = arith.constant 0 : index
    %c0_0 = arith.constant 0 : index
    %0 = vector.load %arg1[%c0, %c0_0] : memref<9x14xf32, #tpu.memory_space<vmem>>, vector<9x14xf32>
    %cst = arith.constant 0.000000e+00 : f32
    %1 = vector.broadcast %cst : f32 to vector<9x14xf32>
    %2 = arith.cmpf one, %0, %1 : vector<9x14xf32>
    %3 = arith.extui %2 : vector<9x14xi1> to vector<9x14xi32>
    %4 = arith.sitofp %3 : vector<9x14xi32> to vector<9x14xf32>
    %5 = arith.truncf %4 : vector<9x14xf32> to vector<9x14xbf16>
    %c0_1 = arith.constant 0 : index
    %c0_2 = arith.constant 0 : index
    %6 = vector.load %arg2[%c0_1, %c0_2] : memref<14x9xf32, #tpu.memory_space<vmem>>, vector<14x9xf32>
    %cst_3 = arith.constant 0.000000e+00 : f32
    %7 = vector.broadcast %cst_3 : f32 to vector<14x9xf32>
    %8 = arith.cmpf one, %6, %7 : vector<14x9xf32>
    %9 = arith.extui %8 : vector<14x9xi1> to vector<14x9xi32>
    %10 = arith.sitofp %9 : vector<14x9xi32> to vector<14x9xf32>
    %11 = arith.truncf %10 : vector<14x9xf32> to vector<14x9xbf16>
    %cst_4 = arith.constant dense<0.000000e+00> : vector<9x9xf32>
    %12 = tpu.matmul %5, %11, %cst_4 {dimension_numbers = #tpu.dot_dimension_numbers<[1], [0], [0], [1], [0, 0, 1, 1], [], []>} : vector<9x14xbf16>, vector<14x9xbf16>, vector<9x9xf32> -> vector<9x9xf32>
    %cst_5 = arith.constant 0.000000e+00 : f32
    %13 = vector.broadcast %cst_5 : f32 to vector<9x9xf32>
    %14 = arith.cmpf one, %12, %13 : vector<9x9xf32>
    %15 = arith.extui %14 : vector<9x9xi1> to vector<9x9xi32>
    %16 = arith.sitofp %15 : vector<9x9xi32> to vector<9x9xf32>
    %c0_6 = arith.constant 0 : index
    %c0_7 = arith.constant 0 : index
    %17 = vector.load %arg3[%c0_6, %c0_7] : memref<9x9xf32, #tpu.memory_space<vmem>>, vector<9x9xf32>
    tpu.vector_store %arg3[%c0_6, %c0_7], %16 {strides = array<i32>} : memref<9x9xf32, #tpu.memory_space<vmem>>, vector<9x9xf32>,
    return
  }
  func.func @transform_0(%arg0: i32) -> (i32, i32) {
    %c0_i32 = arith.constant 0 : i32
    %c0_i32_0 = arith.constant 0 : i32
    %c0_i32_1 = arith.constant 0 : i32
    return %c0_i32, %c0_i32_0 : i32, i32
  }
  func.func @transform_1(%arg0: i32) -> (i32, i32) {
    %c0_i32 = arith.constant 0 : i32
    %c0_i32_0 = arith.constant 0 : i32
    %c0_i32_1 = arith.constant 0 : i32
    return %c0_i32, %c0_i32_0 : i32, i32
  }
  func.func @transform_2(%arg0: i32) -> (i32, i32) {
    %c0_i32 = arith.constant 0 : i32
    %c0_i32_0 = arith.constant 0 : i32
    %c0_i32_1 = arith.constant 0 : i32
    return %c0_i32, %c0_i32_0 : i32, i32
  }
}

module attributes {stable_mosaic.version = 11 : i64} {
  func.func @_gcn_res_kernel(%arg0: i32, %arg1: memref<14x9xf32, #tpu.memory_space<vmem>>, %arg2: memref<9x32xf32, #tpu.memory_space<vmem>>, %arg3: memref<32x32xf32, #tpu.memory_space<vmem>>, %arg4: memref<1x32xf32, #tpu.memory_space<vmem>>, %arg5: memref<14x32xf32, #tpu.memory_space<vmem>>, %arg6: memref<14x32xf32, #tpu.memory_space<vmem>>) attributes {dimension_semantics = [#tpu.dimension_semantics<arbitrary>], iteration_bounds = array<i64: 1>, scalar_prefetch = 0 : i64, scratch_operands = 0 : i64, tpu.core_type = #tpu.core_type<tc>, window_params = [{pipeline_mode = #tpu.pipeline_mode<synchronous>, transform_indices = @transform_0, window_bounds = array<i64: 14, 9>}, {pipeline_mode = #tpu.pipeline_mode<synchronous>, transform_indices = @transform_1, window_bounds = array<i64: 9, 32>}, {pipeline_mode = #tpu.pipeline_mode<synchronous>, transform_indices = @transform_2, window_bounds = array<i64: 32, 32>}, {pipeline_mode = #tpu.pipeline_mode<synchronous>, transform_indices = @transform_3, window_bounds = array<i64: 1, 32>}, {pipeline_mode = #tpu.pipeline_mode<synchronous>, transform_indices = @transform_4, window_bounds = array<i64: 14, 32>}, {pipeline_mode = #tpu.pipeline_mode<synchronous>, transform_indices = @transform_5, window_bounds = array<i64: 14, 32>}]} {
    %c0 = arith.constant 0 : index
    %c0_0 = arith.constant 0 : index
    %0 = vector.load %arg1[%c0, %c0_0] : memref<14x9xf32, #tpu.memory_space<vmem>>, vector<14x9xf32>
    %c0_1 = arith.constant 0 : index
    %c0_2 = arith.constant 0 : index
    %1 = vector.load %arg2[%c0_1, %c0_2] : memref<9x32xf32, #tpu.memory_space<vmem>>, vector<9x32xf32>
    %cst = arith.constant dense<0.000000e+00> : vector<14x32xf32>
    %2 = tpu.matmul %0, %1, %cst {dimension_numbers = #tpu.dot_dimension_numbers<[1], [0], [0], [1], [0, 0, 1, 1], [], []>} : vector<14x9xf32>, vector<9x32xf32>, vector<14x32xf32> -> vector<14x32xf32>
    %c0_3 = arith.constant 0 : index
    %c0_4 = arith.constant 0 : index
    %3 = vector.load %arg3[%c0_3, %c0_4] : memref<32x32xf32, #tpu.memory_space<vmem>>, vector<32x32xf32>
    %cst_5 = arith.constant dense<0.000000e+00> : vector<14x32xf32>
    %4 = tpu.matmul %2, %3, %cst_5 {dimension_numbers = #tpu.dot_dimension_numbers<[1], [0], [0], [1], [0, 0, 1, 1], [], []>} : vector<14x32xf32>, vector<32x32xf32>, vector<14x32xf32> -> vector<14x32xf32>
    %c0_6 = arith.constant 0 : index
    %c0_7 = arith.constant 0 : index
    %5 = vector.load %arg4[%c0_6, %c0_7] : memref<1x32xf32, #tpu.memory_space<vmem>>, vector<1x32xf32>
    %6 = vector.broadcast %5 : vector<1x32xf32> to vector<14x32xf32>
    %7 = arith.addf %4, %6 : vector<14x32xf32>
    %cst_8 = arith.constant 0.000000e+00 : f32
    %8 = vector.broadcast %cst_8 : f32 to vector<14x32xf32>
    %9 = arith.maximumf %7, %8 : vector<14x32xf32>
    %c0_9 = arith.constant 0 : index
    %c0_10 = arith.constant 0 : index
    %10 = vector.load %arg5[%c0_9, %c0_10] : memref<14x32xf32, #tpu.memory_space<vmem>>, vector<14x32xf32>
    %11 = arith.addf %9, %10 : vector<14x32xf32>
    %c0_11 = arith.constant 0 : index
    %c0_12 = arith.constant 0 : index
    %12 = vector.load %arg6[%c0_11, %c0_12] : memref<14x32xf32, #tpu.memory_space<vmem>>, vector<14x32xf32>
    tpu.vector_store %arg6[%c0_11, %c0_12], %11 {strides = array<i32>} : memref<14x32xf32, #tpu.memory_space<vmem>>, vector<14x32xf32>,
    return
  }
  func.func @transform_0(%arg0: i32) -> (i32, i32) {
    %c0_i32 = arith.constant 0 : i32
    %c0_i32_0 = arith.constant 0 : i32
    %c0_i32_1 = arith.constant 0 : i32
    return %c0_i32, %c0_i32_0 : i32, i32
  }
  func.func @transform_1(%arg0: i32) -> (i32, i32) {
    %c0_i32 = arith.constant 0 : i32
    %c0_i32_0 = arith.constant 0 : i32
    %c0_i32_1 = arith.constant 0 : i32
    return %c0_i32, %c0_i32_0 : i32, i32
  }
  func.func @transform_2(%arg0: i32) -> (i32, i32) {
    %c0_i32 = arith.constant 0 : i32
    %c0_i32_0 = arith.constant 0 : i32
    %c0_i32_1 = arith.constant 0 : i32
    return %c0_i32, %c0_i32_0 : i32, i32
  }
  func.func @transform_3(%arg0: i32) -> (i32, i32) {
    %c0_i32 = arith.constant 0 : i32
    %c0_i32_0 = arith.constant 0 : i32
    %c0_i32_1 = arith.constant 0 : i32
    return %c0_i32, %c0_i32_0 : i32, i32
  }
  func.func @transform_4(%arg0: i32) -> (i32, i32) {
    %c0_i32 = arith.constant 0 : i32
    %c0_i32_0 = arith.constant 0 : i32
    %c0_i32_1 = arith.constant 0 : i32
    return %c0_i32, %c0_i32_0 : i32, i32
  }
  func.func @transform_5(%arg0: i32) -> (i32, i32) {
    %c0_i32 = arith.constant 0 : i32
    %c0_i32_0 = arith.constant 0 : i32
    %c0_i32_1 = arith.constant 0 : i32
    return %c0_i32, %c0_i32_0 : i32, i32
  }
}

module attributes {stable_mosaic.version = 11 : i64} {
  func.func @_gcn_kernel(%arg0: i32, %arg1: memref<9x9xf32, #tpu.memory_space<vmem>>, %arg2: memref<9x32xf32, #tpu.memory_space<vmem>>, %arg3: memref<32x32xf32, #tpu.memory_space<vmem>>, %arg4: memref<1x32xf32, #tpu.memory_space<vmem>>, %arg5: memref<9x32xf32, #tpu.memory_space<vmem>>) attributes {dimension_semantics = [#tpu.dimension_semantics<arbitrary>], iteration_bounds = array<i64: 1>, scalar_prefetch = 0 : i64, scratch_operands = 0 : i64, tpu.core_type = #tpu.core_type<tc>, window_params = [{pipeline_mode = #tpu.pipeline_mode<synchronous>, transform_indices = @transform_0, window_bounds = array<i64: 9, 9>}, {pipeline_mode = #tpu.pipeline_mode<synchronous>, transform_indices = @transform_1, window_bounds = array<i64: 9, 32>}, {pipeline_mode = #tpu.pipeline_mode<synchronous>, transform_indices = @transform_2, window_bounds = array<i64: 32, 32>}, {pipeline_mode = #tpu.pipeline_mode<synchronous>, transform_indices = @transform_3, window_bounds = array<i64: 1, 32>}, {pipeline_mode = #tpu.pipeline_mode<synchronous>, transform_indices = @transform_4, window_bounds = array<i64: 9, 32>}]} {
    %c0 = arith.constant 0 : index
    %c0_0 = arith.constant 0 : index
    %0 = vector.load %arg1[%c0, %c0_0] : memref<9x9xf32, #tpu.memory_space<vmem>>, vector<9x9xf32>
    %c0_1 = arith.constant 0 : index
    %c0_2 = arith.constant 0 : index
    %1 = vector.load %arg2[%c0_1, %c0_2] : memref<9x32xf32, #tpu.memory_space<vmem>>, vector<9x32xf32>
    %cst = arith.constant dense<0.000000e+00> : vector<9x32xf32>
    %2 = tpu.matmul %0, %1, %cst {dimension_numbers = #tpu.dot_dimension_numbers<[1], [0], [0], [1], [0, 0, 1, 1], [], []>} : vector<9x9xf32>, vector<9x32xf32>, vector<9x32xf32> -> vector<9x32xf32>
    %c0_3 = arith.constant 0 : index
    %c0_4 = arith.constant 0 : index
    %3 = vector.load %arg3[%c0_3, %c0_4] : memref<32x32xf32, #tpu.memory_space<vmem>>, vector<32x32xf32>
    %cst_5 = arith.constant dense<0.000000e+00> : vector<9x32xf32>
    %4 = tpu.matmul %2, %3, %cst_5 {dimension_numbers = #tpu.dot_dimension_numbers<[1], [0], [0], [1], [0, 0, 1, 1], [], []>} : vector<9x32xf32>, vector<32x32xf32>, vector<9x32xf32> -> vector<9x32xf32>
    %c0_6 = arith.constant 0 : index
    %c0_7 = arith.constant 0 : index
    %5 = vector.load %arg4[%c0_6, %c0_7] : memref<1x32xf32, #tpu.memory_space<vmem>>, vector<1x32xf32>
    %6 = vector.broadcast %5 : vector<1x32xf32> to vector<9x32xf32>
    %7 = arith.addf %4, %6 : vector<9x32xf32>
    %cst_8 = arith.constant 0.000000e+00 : f32
    %8 = vector.broadcast %cst_8 : f32 to vector<9x32xf32>
    %9 = arith.maximumf %7, %8 : vector<9x32xf32>
    %c0_9 = arith.constant 0 : index
    %c0_10 = arith.constant 0 : index
    %10 = vector.load %arg5[%c0_9, %c0_10] : memref<9x32xf32, #tpu.memory_space<vmem>>, vector<9x32xf32>
    tpu.vector_store %arg5[%c0_9, %c0_10], %9 {strides = array<i32>} : memref<9x32xf32, #tpu.memory_space<vmem>>, vector<9x32xf32>,
    return
  }
  func.func @transform_0(%arg0: i32) -> (i32, i32) {
    %c0_i32 = arith.constant 0 : i32
    %c0_i32_0 = arith.constant 0 : i32
    %c0_i32_1 = arith.constant 0 : i32
    return %c0_i32, %c0_i32_0 : i32, i32
  }
  func.func @transform_1(%arg0: i32) -> (i32, i32) {
    %c0_i32 = arith.constant 0 : i32
    %c0_i32_0 = arith.constant 0 : i32
    %c0_i32_1 = arith.constant 0 : i32
    return %c0_i32, %c0_i32_0 : i32, i32
  }
  func.func @transform_2(%arg0: i32) -> (i32, i32) {
    %c0_i32 = arith.constant 0 : i32
    %c0_i32_0 = arith.constant 0 : i32
    %c0_i32_1 = arith.constant 0 : i32
    return %c0_i32, %c0_i32_0 : i32, i32
  }
  func.func @transform_3(%arg0: i32) -> (i32, i32) {
    %c0_i32 = arith.constant 0 : i32
    %c0_i32_0 = arith.constant 0 : i32
    %c0_i32_1 = arith.constant 0 : i32
    return %c0_i32, %c0_i32_0 : i32, i32
  }
  func.func @transform_4(%arg0: i32) -> (i32, i32) {
    %c0_i32 = arith.constant 0 : i32
    %c0_i32_0 = arith.constant 0 : i32
    %c0_i32_1 = arith.constant 0 : i32
    return %c0_i32, %c0_i32_0 : i32, i32
  }
}

module attributes {stable_mosaic.version = 11 : i64} {
  func.func @_gcn_res_kernel(%arg0: i32, %arg1: memref<16x14xf32, #tpu.memory_space<vmem>>, %arg2: memref<14x32xf32, #tpu.memory_space<vmem>>, %arg3: memref<32x32xf32, #tpu.memory_space<vmem>>, %arg4: memref<1x32xf32, #tpu.memory_space<vmem>>, %arg5: memref<16x32xf32, #tpu.memory_space<vmem>>, %arg6: memref<16x32xf32, #tpu.memory_space<vmem>>) attributes {dimension_semantics = [#tpu.dimension_semantics<arbitrary>], iteration_bounds = array<i64: 1>, scalar_prefetch = 0 : i64, scratch_operands = 0 : i64, tpu.core_type = #tpu.core_type<tc>, window_params = [{pipeline_mode = #tpu.pipeline_mode<synchronous>, transform_indices = @transform_0, window_bounds = array<i64: 16, 14>}, {pipeline_mode = #tpu.pipeline_mode<synchronous>, transform_indices = @transform_1, window_bounds = array<i64: 14, 32>}, {pipeline_mode = #tpu.pipeline_mode<synchronous>, transform_indices = @transform_2, window_bounds = array<i64: 32, 32>}, {pipeline_mode = #tpu.pipeline_mode<synchronous>, transform_indices = @transform_3, window_bounds = array<i64: 1, 32>}, {pipeline_mode = #tpu.pipeline_mode<synchronous>, transform_indices = @transform_4, window_bounds = array<i64: 16, 32>}, {pipeline_mode = #tpu.pipeline_mode<synchronous>, transform_indices = @transform_5, window_bounds = array<i64: 16, 32>}]} {
    %c0 = arith.constant 0 : index
    %c0_0 = arith.constant 0 : index
    %0 = vector.load %arg1[%c0, %c0_0] : memref<16x14xf32, #tpu.memory_space<vmem>>, vector<16x14xf32>
    %c0_1 = arith.constant 0 : index
    %c0_2 = arith.constant 0 : index
    %1 = vector.load %arg2[%c0_1, %c0_2] : memref<14x32xf32, #tpu.memory_space<vmem>>, vector<14x32xf32>
    %cst = arith.constant dense<0.000000e+00> : vector<16x32xf32>
    %2 = tpu.matmul %0, %1, %cst {dimension_numbers = #tpu.dot_dimension_numbers<[1], [0], [0], [1], [0, 0, 1, 1], [], []>} : vector<16x14xf32>, vector<14x32xf32>, vector<16x32xf32> -> vector<16x32xf32>
    %c0_3 = arith.constant 0 : index
    %c0_4 = arith.constant 0 : index
    %3 = vector.load %arg3[%c0_3, %c0_4] : memref<32x32xf32, #tpu.memory_space<vmem>>, vector<32x32xf32>
    %cst_5 = arith.constant dense<0.000000e+00> : vector<16x32xf32>
    %4 = tpu.matmul %2, %3, %cst_5 {dimension_numbers = #tpu.dot_dimension_numbers<[1], [0], [0], [1], [0, 0, 1, 1], [], []>} : vector<16x32xf32>, vector<32x32xf32>, vector<16x32xf32> -> vector<16x32xf32>
    %c0_6 = arith.constant 0 : index
    %c0_7 = arith.constant 0 : index
    %5 = vector.load %arg4[%c0_6, %c0_7] : memref<1x32xf32, #tpu.memory_space<vmem>>, vector<1x32xf32>
    %6 = vector.broadcast %5 : vector<1x32xf32> to vector<16x32xf32>
    %7 = arith.addf %4, %6 : vector<16x32xf32>
    %cst_8 = arith.constant 0.000000e+00 : f32
    %8 = vector.broadcast %cst_8 : f32 to vector<16x32xf32>
    %9 = arith.maximumf %7, %8 : vector<16x32xf32>
    %c0_9 = arith.constant 0 : index
    %c0_10 = arith.constant 0 : index
    %10 = vector.load %arg5[%c0_9, %c0_10] : memref<16x32xf32, #tpu.memory_space<vmem>>, vector<16x32xf32>
    %11 = arith.addf %9, %10 : vector<16x32xf32>
    %c0_11 = arith.constant 0 : index
    %c0_12 = arith.constant 0 : index
    %12 = vector.load %arg6[%c0_11, %c0_12] : memref<16x32xf32, #tpu.memory_space<vmem>>, vector<16x32xf32>
    tpu.vector_store %arg6[%c0_11, %c0_12], %11 {strides = array<i32>} : memref<16x32xf32, #tpu.memory_space<vmem>>, vector<16x32xf32>,
    return
  }
  func.func @transform_0(%arg0: i32) -> (i32, i32) {
    %c0_i32 = arith.constant 0 : i32
    %c0_i32_0 = arith.constant 0 : i32
    %c0_i32_1 = arith.constant 0 : i32
    return %c0_i32, %c0_i32_0 : i32, i32
  }
  func.func @transform_1(%arg0: i32) -> (i32, i32) {
    %c0_i32 = arith.constant 0 : i32
    %c0_i32_0 = arith.constant 0 : i32
    %c0_i32_1 = arith.constant 0 : i32
    return %c0_i32, %c0_i32_0 : i32, i32
  }
  func.func @transform_2(%arg0: i32) -> (i32, i32) {
    %c0_i32 = arith.constant 0 : i32
    %c0_i32_0 = arith.constant 0 : i32
    %c0_i32_1 = arith.constant 0 : i32
    return %c0_i32, %c0_i32_0 : i32, i32
  }
  func.func @transform_3(%arg0: i32) -> (i32, i32) {
    %c0_i32 = arith.constant 0 : i32
    %c0_i32_0 = arith.constant 0 : i32
    %c0_i32_1 = arith.constant 0 : i32
    return %c0_i32, %c0_i32_0 : i32, i32
  }
  func.func @transform_4(%arg0: i32) -> (i32, i32) {
    %c0_i32 = arith.constant 0 : i32
    %c0_i32_0 = arith.constant 0 : i32
    %c0_i32_1 = arith.constant 0 : i32
    return %c0_i32, %c0_i32_0 : i32, i32
  }
  func.func @transform_5(%arg0: i32) -> (i32, i32) {
    %c0_i32 = arith.constant 0 : i32
    %c0_i32_0 = arith.constant 0 : i32
    %c0_i32_1 = arith.constant 0 : i32
    return %c0_i32, %c0_i32_0 : i32, i32
  }
}

</mosaic_0001>

<bundles_post_ra>
// kernel: _lambda_.7
= control target key start
LH: loop header
LB: loop body
LE: loop exit
PB: predicated region body
PF: predicated region fallthrough
CT: control target
= control target key end

     0   :  { %s482_s0 = inlined_call_operand.vmem [shape: f32[16,16], index: 0, kind: input, shape index: {}]   ;;  %s483_s1 = inlined_call_operand.vmem [shape: f32[16,32], index: 1, kind: input, shape index: {}]   ;;  %s484_s2 = inlined_call_operand.hbm [shape: f32[32,32], index: 2, kind: input, shape index: {}]   ;;  %s485_s3 = inlined_call_operand.vmem [shape: f32[1,32], index: 3, kind: input, shape index: {}]   ;;  %s486_s4 = inlined_call_operand.hbm [shape: f32[1,32], index: 4, kind: input, shape index: {}]   ;;  %s487_s5 = inlined_call_operand.<no memory space> [shape: f32[1,1], index: 5, kind: input, shape index: {}]   ;;  %s488_s6 = inlined_call_operand.vmem [shape: f32[16,32], index: 6, kind: output, shape index: {0}]   ;;  %s489_s7 = inlined_call_operand.vmem [shape: f32[1,16], index: 7, kind: output, shape index: {1}]  }
   0x1   :  { %v13_v0 = vstv %s487_s5 }
   0x2   :  { %14 = vst [vmem:[#allocation2] sm:$0x1] %v13_v0 }
   0x3   :  { %15 = vsyncpa [#allocation4], 0 }
   0x4   :  { %16 = vsyncpa [#allocation6], 0  ;;  %s398_s26 = smov [#allocation3]  }
   0x5   :  { %s26_s27 = sshll.u32 %s398_s26, 4  ;;  %s27_s27 = int_to_ptr.vmem [resolvable:$true] %s26_s27 }
   0x6   :  { %s362_s28 = scalar_lea.vmem %s27_s27, 512  ;;  %p367_p1 = scmp.lt.s32.totalorder %s27_s27, %s27_s27 }
   0x7   :  { %p363_p0 = scmp.ne.s32.totalorder %s27_s27, %s362_s28  ;;  %p368_p2 = scmp.lt.s32.totalorder %s362_s28, %s362_s28 }
   0x9   :  { %p369_p3 = por %p368_p2, %p367_p1 }
   0xb   :  { %p370_p4 = pnand %p369_p3, %p363_p0 }
   0xd   :  { %373 = shalt.err (!%p370_p4)
}
   0xe   :  { %s399_s29 = smov 128   ;;  %s400_s30 = smov 8  }
   0xf   :  { %32 = dma.hbm_to_vmem [thread:$0]  %s484_s2, 512, %s27_s27, [#allocation4], %s399_s29, %s399_s29, %s400_s30  }
  0x10   :  { %s401_s5 = smov [#allocation5]  }
  0x11   :  { %s41_s10 = sshll.u32 %s401_s5, 4  ;;  %s42_s10 = int_to_ptr.vmem [resolvable:$true] %s41_s10 }
  0x12   :  { %s382_s11 = scalar_lea.vmem %s42_s10, 16  ;;  %s386_s12 = scalar_lea.vmem %s42_s10, 32 }
  0x13   :  { %p383_p5 = scmp.ne.s32.totalorder %s42_s10, %s382_s11  ;;  %p387_p6 = scmp.lt.s32.totalorder %s42_s10, %s42_s10 }
  0x14   :  { %p388_p7 = scmp.lt.s32.totalorder %s386_s12, %s382_s11 }
  0x16   :  { %p389_p8 = por %p388_p7, %p387_p6 }
  0x18   :  { %p390_p9 = pnand %p389_p8, %p383_p5 }
  0x1a   :  { %393 = shalt.err (!%p390_p9)
}
  0x1b   :  { %44 = dma.hbm_to_vmem [thread:$0]  %s486_s4, 16, %s42_s10, [#allocation6]  }
  0x1c   :  { %394 = dma.done.wait [#allocation4], 512  }
  0x1d   :  { %395 = vsyncadd [#allocation4], 4294966784 }
  0x1e   :  { %396 = dma.done.wait [#allocation6], 16  }
  0x1f   :  { %397 = vsyncadd [#allocation6], 4294967280  ;;  %vm57_vm0 = vcmask 130048   ;;  %v56_v1 = vld [vmem:[%s483_s1 + $0x8] sm:$0xff]  ;;  %v55_v2 = vld [vmem:[%s483_s1] sm:$0xff]  ;;  %vm150_vm1 = vcmask 261120   ;;  %v257_v25 = vlaneseq }
  0x20   :  { %v53_v3 = vld [vmem:[%s482_s0] sm:$0xff]  ;;  %321 = vmatprep.subr.mxu0 %v56_v1  ;;  %v141_v5 = vld [vmem:[#allocation3 + $0x10] sm:$0xff]  ;;  %v54_v6 = vld [vmem:[%s482_s0 + $0x8] sm:$0xff]  ;;  %v402_v12 = vmov 0   ;;  %vm288_vm2 = vcmask 130112   ;;  %vm291_vm3 = vcmask 122880  }
  0x21   :  { %325 = vmatprep.mubr.msk.f32.mxu0 %vm57_vm0, %v53_v3  ;;  %v142_v4 = vld [vmem:[#allocation3 + $0x18] sm:$0xff]  ;;  %322 = vmatpush3.msra.mxu0 %v56_v1  ;;  %v140_v7 = vld [vmem:[#allocation3 + $0x8] sm:$0xff]  ;;  %v139_v8 = vld [vmem:[#allocation3] sm:$0xff]  ;;  %v258_v26 = vshrl.u32 %v257_v25, 7  ;;  %v278_v40 = vand.u32 127, %v257_v25 }
  0x22   :  { %328 = vmatprep.subr.mxu1 %v142_v4  ;;  %323 = vmatprep.subr.mxu0 %v55_v2  ;;  %v251_v11 = vld [vmem:[#allocation2] sm:$0x1]  ;;  %v308_v20 = vld [vmem:[#allocation5] ss:$0 sm:$0xff] }
  0x23   :  { %329 = vmatpush3.msra.mxu1 %v142_v4  ;;  %324 = vmatpush3.msra.mxu0 %v55_v2  ;;  %v305_v13 = vld [vmem:[%s485_s3] ss:$0 sm:$0xff]  ;;  %v259_v27 = vsub.s32 0, %v258_v26  ;;  %v283_v41 = vadd.s32 4294967288, %v278_v40  ;;  %v281_v42 = vsub.s32 %v278_v40, %v258_v26 }
  0x24   :  { %330 = vmatprep.subr.mxu1 %v141_v5  ;;  %326 = vmatmul.mubr.msk.f32.vlgmr.msra.gmra.mxu0 %vm57_vm0, %v54_v6 }
  0x25   :  { %331 = vmatpush3.msra.mxu1 %v141_v5  ;;  %344 = vset.pattern.permute.xlu1 %v402_v12  ;;  %v286_v43 = vsub.s32 %v283_v41, %v258_v26 }
  0x26   :  { %332 = vmatprep.subr.mxu1 %v140_v7  ;;  %345 = vset.pattern.permute.xlu0 %v402_v12 }
  0x27   :  { %333 = vmatpush3.msra.mxu1 %v140_v7  ;;  %254 = vperm.xlu1 %344, %v251_v11  }
  0x28   :  { %334 = vmatprep.subr.mxu1 %v139_v8 }
  0x29   :  { %335 = vmatpush3.msra.mxu1 %v139_v8 }
  0xa2   :  { %v255_v28 = vpop.permute.xlu1 %254 }
  0xa3   :  { %v260_v29 = vrot.slane %v255_v28, %v259_v27 }
  0xe4   :  { %v327_v9 = vpop.f32.mrf.mxu0 }
  0xe6   :  { %v130_v10 = vpop.f32.mrf.mxu0 }
  0xe7   :  { %336 = vmatprep.mubr.msk.f32.mxu1 %vm150_vm1, %v130_v10 }
  0xe8   :  { %337 = vmatmul.mubr.msk.f32.vlgmr.msra.gmra.mxu1 %vm150_vm1, %v327_v9 }
 0x1a8   :  { %v338_v14 = vpop.f32.mrf.mxu1 }
 0x1a9   :  { %v229_v15 = vadd.f32 %v338_v14, %v305_v13 }
 0x1aa   :  { %v223_v16 = vpop.f32.mrf.mxu1 }
 0x1ab   :  { %v233_v17 = vmax.f32 %v229_v15, 0.0  ;;  %v224_v18 = vadd.f32 %v305_v13, %v223_v16 }
 0x1ad   :  { %235 = vst.msk [vmem:[%s488_s6 + $0x8] sm:$0xff] %vm150_vm1, %v233_v17  ;;  %v232_v19 = vmax.f32 %v224_v18, 0.0  ;;  %v244_v23 = vmul.f32 %v308_v20, %v233_v17 }
 0x1af   :  { %234 = vst.msk [vmem:[%s488_s6] sm:$0xff] %vm150_vm1, %v232_v19  ;;  %v243_v21 = vmul.f32 %v308_v20, %v232_v19  ;;  %v248_v24 = vsel %vm150_vm1, %v244_v23, 0.0 }
 0x1b1   :  { %v245_v22 = vsel %vm150_vm1, %v243_v21, 0.0 }
 0x1b2   :  { %246 = vadd.xlane.f32.xlu0 %v245_v22 }
 0x1b6   :  { %249 = vadd.xlane.f32.xlu0 %v248_v24 }
 0x23b   :  { %v247_v30 = vpop.xlane.xlu0 %246 }
 0x23c   :  { %v261_v31 = vadd.f32 %v260_v29, %v247_v30 }
 0x23e   :  { %v309_v32 = vmul.f32 -1.442695, %v261_v31 }
 0x23f   :  { %v250_v33 = vpop.xlane.xlu0 %249 }
 0x240   :  { %346 = vpow2.f32 %v309_v32  ;;  %v262_v34 = vadd.f32 %v260_v29, %v250_v33 }
 0x242   :  { %v310_v35 = vmul.f32 -1.442695, %v262_v34 }
 0x244   :  { %348 = vpow2.f32 %v310_v35 }
 0x24d   :  { %v347_v36 = vpop.eup %346 }
 0x24e   :  { %v269_v37 = vadd.f32 1.0, %v347_v36 }
 0x250   :  { %350 = vrcp.f32 %v269_v37 }
 0x251   :  { %v349_v38 = vpop.eup %348 }
 0x252   :  { %v270_v39 = vadd.f32 1.0, %v349_v38 }
 0x254   :  { %352 = vrcp.f32 %v270_v39 }
 0x25d   :  { %v351_v44 = vpop.eup %350 }
 0x25e   :  { %v282_v46 = vrot.slane %v351_v44, %v281_v42 }
 0x261   :  { %v353_v45 = vpop.eup %352 }
 0x262   :  { %v287_v47 = vrot.slane %v353_v45, %v286_v43 }
 0x264   :  { %v289_v48 = vsel %vm288_vm2, %v287_v47, %v282_v46 }
 0x265   :  { %292 = vst.msk [vmem:[%s489_s7] sm:$0x1] %vm291_vm3, %v289_v48 }
 0x266   :  { %301 = vsyncpa [#allocation4], 1 }
 0x267   :  { %302 = vsyncpa [#allocation6], 1 }

// kernel: _lambda_.8
= control target key start
LH: loop header
LB: loop body
LE: loop exit
PB: predicated region body
PF: predicated region fallthrough
CT: control target
= control target key end

     0   :  { %v109_v0 = vmov 0.0   ;;  %vm110_vm0 = vmmov 0   ;;  %v111_v6 = vmov 1.0|1.0   ;;  %vm30_vm6 = vcmask 130048   ;;  %s145_s1 = inlined_call_operand.vmem [shape: f32[16,14], index: 1, kind: input, shape index: {}]   ;;  %s146_s0 = inlined_call_operand.vmem [shape: f32[14,16], index: 0, kind: input, shape index: {}]   ;;  %s147_s2 = inlined_call_operand.vmem [shape: f32[14,14], index: 2, kind: output, shape index: {}]  }
   0x1   :  { %100 = vmatprep.subr.bf16.mxu0 %v109_v0  ;;  %v21_v1 = vld [vmem:[%s145_s1] sm:$0xff]  ;;  %v22_v2 = vld [vmem:[%s145_s1 + $0x8] sm:$0xff]  ;;  %102 = vmatprep.mubr.msk.bf16.mxu0 %vm110_vm0, %v109_v0  ;;  %vm81_vm7 = vcmask 113664   ;;  %vm83_vm9 = vcmask 111616  }
   0x2   :  { %v12_v3 = vld [vmem:[%s146_s0] sm:$0xff]  ;;  %vm23_vm1 = vcmp.ne.f32.partialorder %v21_v1, 0.0  ;;  %vm24_vm2 = vcmp.ne.f32.partialorder %v22_v2, 0.0  ;;  %v13_v4 = vld [vmem:[%s146_s0 + $0x8] sm:$0x3f] }
   0x3   :  { %vm14_vm3 = vcmp.ne.f32.partialorder %v12_v3, 0.0  ;;  %vm93_vm4 = vmpackc.low %vm24_vm2, %vm23_vm1  ;;  %vm15_vm5 = vcmp.ne.f32.partialorder %v13_v4, 0.0 }
   0x4   :  { %v89_v5 = vsel %vm14_vm3, 1.0, %v109_v0  ;;  %101 = vmatpush3.bf16.msk.msra.mxu0 %vm93_vm4, %v111_v6  ;;  %v90_v7 = vsel %vm15_vm5, 1.0, %v109_v0 }
   0x5   :  { %v20_v8 = vpack.c.bf16 %v90_v7, %v89_v5 }
   0x7   :  { %103 = vmatmul.mubr.msk.bf16.vlgmr.msra.gmra.mxu0 %vm30_vm6, %v20_v8 }
  0xc7   :  { %v68_v9 = vpop.f32.mrf.mxu0 }
  0xc8   :  { %vm75_vm8 = vcmp.ne.f32.partialorder %v68_v9, 0.0 }
  0xc9   :  { %v96_v10 = vsel %vm75_vm8, 1.0, %v109_v0  ;;  %v104_v11 = vpop.f32.mrf.mxu0 }
  0xca   :  { %82 = vst.msk [vmem:[%s147_s2] sm:$0xff] %vm81_vm7, %v96_v10 }
  0xcb   :  { %v71_v12 = vpop.f32.mrf.mxu0 }
  0xcc   :  { %vm76_vm10 = vcmp.ne.f32.partialorder %v71_v12, 0.0 }
  0xcd   :  { %v97_v13 = vsel %vm76_vm10, 1.0, %v109_v0  ;;  %v105_v14 = vpop.f32.mrf.mxu0 }
  0xce   :  { %84 = vst.msk [vmem:[%s147_s2 + $0x8] sm:$0x3f] %vm83_vm9, %v97_v13 }

// kernel: _lambda_.9
= control target key start
LH: loop header
LB: loop body
LE: loop exit
PB: predicated region body
PF: predicated region fallthrough
CT: control target
= control target key end

     0   :  { %vm38_vm0 = vcmask 1045504   ;;  %vm31_vm1 = vcmask 113664   ;;  %vm128_vm2 = vcmask 261120   ;;  %v328_v11 = vmov 0   ;;  %s417_s1 = inlined_call_operand.vmem [shape: f32[14,32], index: 1, kind: input, shape index: {}]   ;;  %s418_s0 = inlined_call_operand.vmem [shape: f32[14,14], index: 0, kind: input, shape index: {}]   ;;  %s419_s2 = inlined_call_operand.vmem [shape: f32[32,32], index: 2, kind: input, shape index: {}]   ;;  %s420_s5 = inlined_call_operand.<no memory space> [shape: f32[1,1], index: 5, kind: input, shape index: {}]   ;;  %s421_s3 = inlined_call_operand.vmem [shape: f32[1,32], index: 3, kind: input, shape index: {}]   ;;  %s422_s6 = inlined_call_operand.vmem [shape: f32[14,32], index: 6, kind: output, shape index: {0}]   ;;  %s423_s4 = inlined_call_operand.vmem [shape: f32[1,32], index: 4, kind: input, shape index: {}]   ;;  %s424_s7 = inlined_call_operand.vmem [shape: f32[1,14], index: 7, kind: output, shape index: {1}]  }
   0x1   :  { %v30_v0 = vld [vmem:[%s417_s1 + $0x8] sm:$0x3f]  ;;  %v29_v1 = vld [vmem:[%s417_s1] sm:$0xff]  ;;  %v120_v3 = vld [vmem:[%s419_s2 + $0x18] sm:$0xff]  ;;  %v13_v10 = vstv %s420_s5  ;;  %318 = vset.pattern.permute.xlu1 %v328_v11  ;;  %319 = vset.pattern.permute.xlu0 %v328_v11  ;;  %vm213_vm3 = vcmask 259072   ;;  %v236_v25 = vlaneseq  ;;  %vm267_vm4 = vcmask 130112  }
   0x2   :  { %v27_v2 = vld [vmem:[%s418_s0] sm:$0xff]  ;;  %299 = vmatprep.subr.msk.mxu0 %vm38_vm0, %v30_v0  ;;  %v119_v4 = vld [vmem:[%s419_s2 + $0x10] sm:$0xff]  ;;  %v28_v5 = vld [vmem:[%s418_s0 + $0x8] sm:$0x3f]  ;;  %306 = vmatprep.subr.mxu1 %v120_v3  ;;  %14 = vst [vmem:[#allocation2] sm:$0x1] %v13_v10 }
   0x3   :  { %303 = vmatprep.mubr.msk.f32.mxu0 %vm31_vm1, %v27_v2  ;;  %300 = vmatpush3.msk.msra.mxu0 %vm38_vm0, %v30_v0  ;;  %v118_v6 = vld [vmem:[%s419_s2 + $0x8] sm:$0xff]  ;;  %v117_v7 = vld [vmem:[%s419_s2] sm:$0xff]  ;;  %v237_v26 = vshrl.u32 %v236_v25, 7  ;;  %v257_v40 = vand.u32 127, %v236_v25  ;;  %vm270_vm5 = vcmask 106496  }
   0x4   :  { %301 = vmatprep.subr.mxu0 %v29_v1  ;;  %307 = vmatpush3.msra.mxu1 %v120_v3  ;;  %v283_v13 = vld [vmem:[%s421_s3] ss:$0 sm:$0xff] }
   0x5   :  { %302 = vmatpush3.msra.mxu0 %v29_v1  ;;  %308 = vmatprep.subr.mxu1 %v119_v4  ;;  %v286_v20 = vld [vmem:[%s423_s4] ss:$0 sm:$0xff]  ;;  %v238_v27 = vsub.s32 0, %v237_v26  ;;  %v262_v41 = vadd.s32 4294967288, %v257_v40  ;;  %v260_v42 = vsub.s32 %v257_v40, %v237_v26 }
   0x6   :  { %304 = vmatmul.mubr.msk.f32.vlgmr.msra.gmra.mxu0 %vm31_vm1, %v28_v5  ;;  %309 = vmatpush3.msra.mxu1 %v119_v4 }
   0x7   :  { %310 = vmatprep.subr.mxu1 %v118_v6  ;;  %v265_v43 = vsub.s32 %v262_v41, %v237_v26 }
   0x8   :  { %311 = vmatpush3.msra.mxu1 %v118_v6 }
   0x9   :  { %312 = vmatprep.subr.mxu1 %v117_v7  ;;  %v230_v12 = vld [vmem:[#allocation2] sm:$0x1] }
   0xa   :  { %313 = vmatpush3.msra.mxu1 %v117_v7  ;;  %233 = vperm.xlu1 %318, %v230_v12  }
  0x85   :  { %v234_v28 = vpop.permute.xlu1 %233 }
  0x86   :  { %v239_v29 = vrot.slane %v234_v28, %v238_v27 }
  0xc6   :  { %v305_v8 = vpop.f32.mrf.mxu0 }
  0xc8   :  { %v108_v9 = vpop.f32.mrf.mxu0 }
  0xc9   :  { %314 = vmatprep.mubr.msk.f32.mxu1 %vm128_vm2, %v108_v9 }
  0xca   :  { %315 = vmatmul.mubr.msk.f32.vlgmr.msra.gmra.mxu1 %vm128_vm2, %v305_v8 }
 0x18a   :  { %v316_v14 = vpop.f32.mrf.mxu1 }
 0x18b   :  { %v207_v15 = vadd.f32 %v316_v14, %v283_v13 }
 0x18c   :  { %v201_v16 = vpop.f32.mrf.mxu1 }
 0x18d   :  { %v211_v17 = vmax.f32 %v207_v15, 0.0  ;;  %v202_v18 = vadd.f32 %v283_v13, %v201_v16 }
 0x18f   :  { %v210_v19 = vmax.f32 %v202_v18, 0.0  ;;  %214 = vst.msk [vmem:[%s422_s6 + $0x8] sm:$0x3f] %vm213_vm3, %v211_v17  ;;  %v223_v23 = vmul.f32 %v286_v20, %v211_v17 }
 0x191   :  { %212 = vst.msk [vmem:[%s422_s6] sm:$0xff] %vm128_vm2, %v210_v19  ;;  %v222_v21 = vmul.f32 %v286_v20, %v210_v19  ;;  %v227_v24 = vsel %vm213_vm3, %v223_v23, 0.0 }
 0x193   :  { %v224_v22 = vsel %vm128_vm2, %v222_v21, 0.0 }
 0x194   :  { %225 = vadd.xlane.f32.xlu0 %v224_v22 }
 0x198   :  { %228 = vadd.xlane.f32.xlu0 %v227_v24 }
 0x21d   :  { %v226_v30 = vpop.xlane.xlu0 %225 }
 0x21e   :  { %v240_v31 = vadd.f32 %v239_v29, %v226_v30 }
 0x220   :  { %v287_v32 = vmul.f32 -1.442695, %v240_v31 }
 0x221   :  { %v229_v33 = vpop.xlane.xlu0 %228 }
 0x222   :  { %320 = vpow2.f32 %v287_v32  ;;  %v241_v34 = vadd.f32 %v239_v29, %v229_v33 }
 0x224   :  { %v288_v35 = vmul.f32 -1.442695, %v241_v34 }
 0x226   :  { %322 = vpow2.f32 %v288_v35 }
 0x22f   :  { %v321_v36 = vpop.eup %320 }
 0x230   :  { %v248_v37 = vadd.f32 1.0, %v321_v36 }
 0x232   :  { %324 = vrcp.f32 %v248_v37 }
 0x233   :  { %v323_v38 = vpop.eup %322 }
 0x234   :  { %v249_v39 = vadd.f32 1.0, %v323_v38 }
 0x236   :  { %326 = vrcp.f32 %v249_v39 }
 0x23f   :  { %v325_v44 = vpop.eup %324 }
 0x240   :  { %v261_v46 = vrot.slane %v325_v44, %v260_v42 }
 0x243   :  { %v327_v45 = vpop.eup %326 }
 0x244   :  { %v266_v47 = vrot.slane %v327_v45, %v265_v43 }
 0x246   :  { %v268_v48 = vsel %vm267_vm4, %v266_v47, %v261_v46 }
 0x247   :  { %271 = vst.msk [vmem:[%s424_s7] sm:$0x1] %vm270_vm5, %v268_v48 }

// kernel: _lambda_.10
= control target key start
LH: loop header
LB: loop body
LE: loop exit
PB: predicated region body
PF: predicated region fallthrough
CT: control target
= control target key end

     0   :  { %v110_v0 = vmov 0.0   ;;  %vm111_vm0 = vmmov 0   ;;  %vm34_vm3 = vcmask 1046528   ;;  %vm30_vm6 = vcmask 113664   ;;  %s145_s1 = inlined_call_operand.vmem [shape: f32[14,9], index: 1, kind: input, shape index: {}]   ;;  %s146_s0 = inlined_call_operand.vmem [shape: f32[9,14], index: 0, kind: input, shape index: {}]   ;;  %s147_s2 = inlined_call_operand.vmem [shape: f32[9,9], index: 2, kind: output, shape index: {}]  }
   0x1   :  { %102 = vmatprep.subr.bf16.mxu0 %v110_v0  ;;  %v21_v1 = vld [vmem:[%s145_s1] sm:$0xff]  ;;  %v22_v2 = vld [vmem:[%s145_s1 + $0x8] sm:$0x3f]  ;;  %104 = vmatprep.mubr.msk.bf16.mxu0 %vm111_vm0, %v110_v0  ;;  %vm85_vm7 = vcmask 72704   ;;  %vm87_vm9 = vcmask 65536  }
   0x2   :  { %v12_v3 = vld [vmem:[%s146_s0] sm:$0xff]  ;;  %vm23_vm1 = vcmp.ne.f32.partialorder %v21_v1, 0.0  ;;  %vm24_vm2 = vcmp.ne.f32.partialorder %v22_v2, 0.0  ;;  %v13_v4 = vld [vmem:[%s146_s0 + $0x8] sm:$0x1] }
   0x3   :  { %vm14_vm4 = vcmp.ne.f32.partialorder %v12_v3, 0.0  ;;  %v95_v5 = vsel %vm23_vm1, 1.0, %v110_v0  ;;  %v96_v6 = vsel %vm24_vm2, 1.0, %v110_v0  ;;  %vm15_vm5 = vcmp.ne.f32.partialorder %v13_v4, 0.0 }
   0x4   :  { %v93_v7 = vsel %vm14_vm4, 1.0, %v110_v0  ;;  %v29_v8 = vpack.c.bf16 %v96_v6, %v95_v5  ;;  %v94_v9 = vsel %vm15_vm5, 1.0, %v110_v0 }
   0x5   :  { %v20_v11 = vpack.c.bf16 %v94_v9, %v93_v7 }
   0x6   :  { %v36_v10 = vsel %vm34_vm3, %v29_v8, 0 }
   0x7   :  { %103 = vmatpush3.bf16.msra.mxu0 %v36_v10 }
   0xa   :  { %105 = vmatmul.mubr.msk.bf16.vlgmr.msra.gmra.mxu0 %vm30_vm6, %v20_v11 }
  0xca   :  { %v72_v12 = vpop.f32.mrf.mxu0 }
  0xcb   :  { %vm79_vm8 = vcmp.ne.f32.partialorder %v72_v12, 0.0 }
  0xcc   :  { %v98_v13 = vsel %vm79_vm8, 1.0, %v110_v0  ;;  %v106_v14 = vpop.f32.mrf.mxu0 }
  0xcd   :  { %86 = vst.msk [vmem:[%s147_s2] sm:$0xff] %vm85_vm7, %v98_v13 }
  0xce   :  { %v75_v15 = vpop.f32.mrf.mxu0 }
  0xcf   :  { %vm80_vm10 = vcmp.ne.f32.partialorder %v75_v15, 0.0 }
  0xd0   :  { %v99_v16 = vsel %vm80_vm10, 1.0, %v110_v0  ;;  %v107_v17 = vpop.f32.mrf.mxu0 }
  0xd1   :  { %88 = vst.msk [vmem:[%s147_s2 + $0x8] sm:$0x1] %vm87_vm9, %v99_v16 }

// kernel: _lambda_.12
= control target key start
LH: loop header
LB: loop body
LE: loop exit
PB: predicated region body
PF: predicated region fallthrough
CT: control target
= control target key end

     0   :  { %vm31_vm0 = vcmask 1040384   ;;  %vm24_vm1 = vcmask 72704   ;;  %vm121_vm2 = vcmask 261120   ;;  %vm210_vm3 = vcmask 259072   ;;  %s324_s1 = inlined_call_operand.vmem [shape: f32[9,32], index: 1, kind: input, shape index: {}]   ;;  %s325_s0 = inlined_call_operand.vmem [shape: f32[14,9], index: 0, kind: input, shape index: {}]   ;;  %s326_s2 = inlined_call_operand.vmem [shape: f32[32,32], index: 2, kind: input, shape index: {}]   ;;  %s327_s3 = inlined_call_operand.vmem [shape: f32[1,32], index: 3, kind: input, shape index: {}]   ;;  %s328_s4 = inlined_call_operand.vmem [shape: f32[14,32], index: 4, kind: input, shape index: {}]   ;;  %s329_s5 = inlined_call_operand.vmem [shape: f32[14,32], index: 5, kind: output, shape index: {}]  }
   0x1   :  { %v23_v0 = vld [vmem:[%s324_s1 + $0x8] sm:$0x1]  ;;  %v22_v1 = vld [vmem:[%s324_s1] sm:$0xff]  ;;  %v113_v3 = vld [vmem:[%s326_s2 + $0x18] sm:$0xff] }
   0x2   :  { %v20_v2 = vld [vmem:[%s325_s0] sm:$0xff]  ;;  %232 = vmatprep.subr.msk.mxu0 %vm31_vm0, %v23_v0  ;;  %v112_v4 = vld [vmem:[%s326_s2 + $0x10] sm:$0xff]  ;;  %v21_v5 = vld [vmem:[%s325_s0 + $0x8] sm:$0x3f]  ;;  %239 = vmatprep.subr.mxu1 %v113_v3 }
   0x3   :  { %236 = vmatprep.mubr.msk.f32.mxu0 %vm24_vm1, %v20_v2  ;;  %233 = vmatpush3.msk.msra.mxu0 %vm31_vm0, %v23_v0  ;;  %v111_v6 = vld [vmem:[%s326_s2 + $0x8] sm:$0xff]  ;;  %v110_v7 = vld [vmem:[%s326_s2] sm:$0xff] }
   0x4   :  { %234 = vmatprep.subr.mxu0 %v22_v1  ;;  %240 = vmatpush3.msra.mxu1 %v113_v3  ;;  %v219_v10 = vld [vmem:[%s327_s3] ss:$0 sm:$0xff]  ;;  %v206_v13 = vld [vmem:[%s328_s4 + $0x8] sm:$0x3f] }
   0x5   :  { %235 = vmatpush3.msra.mxu0 %v22_v1  ;;  %241 = vmatprep.subr.mxu1 %v112_v4  ;;  %v205_v17 = vld [vmem:[%s328_s4] sm:$0xff] }
   0x6   :  { %237 = vmatmul.mubr.msk.f32.vlgmr.msra.gmra.mxu0 %vm24_vm1, %v21_v5  ;;  %242 = vmatpush3.msra.mxu1 %v112_v4 }
   0x7   :  { %243 = vmatprep.subr.mxu1 %v111_v6 }
   0x8   :  { %244 = vmatpush3.msra.mxu1 %v111_v6 }
   0x9   :  { %245 = vmatprep.subr.mxu1 %v110_v7 }
   0xa   :  { %246 = vmatpush3.msra.mxu1 %v110_v7 }
  0xc6   :  { %v238_v8 = vpop.f32.mrf.mxu0 }
  0xc8   :  { %v101_v9 = vpop.f32.mrf.mxu0 }
  0xc9   :  { %247 = vmatprep.mubr.msk.f32.mxu1 %vm121_vm2, %v101_v9 }
  0xca   :  { %248 = vmatmul.mubr.msk.f32.vlgmr.msra.gmra.mxu1 %vm121_vm2, %v238_v8 }
 0x18a   :  { %v249_v11 = vpop.f32.mrf.mxu1 }
 0x18b   :  { %v200_v12 = vadd.f32 %v249_v11, %v219_v10 }
 0x18c   :  { %v194_v14 = vpop.f32.mrf.mxu1 }
 0x18d   :  { %v204_v15 = vmax.f32 %v200_v12, 0.0  ;;  %v195_v16 = vadd.f32 %v219_v10, %v194_v14 }
 0x18f   :  { %v208_v18 = vadd.f32 %v206_v13, %v204_v15  ;;  %v203_v19 = vmax.f32 %v195_v16, 0.0 }
 0x191   :  { %211 = vst.msk [vmem:[%s329_s5 + $0x8] sm:$0x3f] %vm210_vm3, %v208_v18  ;;  %v207_v20 = vadd.f32 %v205_v17, %v203_v19 }
 0x193   :  { %209 = vst.msk [vmem:[%s329_s5] sm:$0xff] %vm121_vm2, %v207_v20 }

// kernel: _lambda_.11
= control target key start
LH: loop header
LB: loop body
LE: loop exit
PB: predicated region body
PF: predicated region fallthrough
CT: control target
= control target key end

     0   :  { %vm28_vm0 = vcmask 1040384   ;;  %vm21_vm1 = vcmask 72704   ;;  %vm118_vm2 = vcmask 261120   ;;  %vm203_vm3 = vcmask 253952   ;;  %s303_s1 = inlined_call_operand.vmem [shape: f32[9,32], index: 1, kind: input, shape index: {}]   ;;  %s304_s0 = inlined_call_operand.vmem [shape: f32[9,9], index: 0, kind: input, shape index: {}]   ;;  %s305_s2 = inlined_call_operand.vmem [shape: f32[32,32], index: 2, kind: input, shape index: {}]   ;;  %s306_s3 = inlined_call_operand.vmem [shape: f32[1,32], index: 3, kind: input, shape index: {}]   ;;  %s307_s4 = inlined_call_operand.vmem [shape: f32[9,32], index: 4, kind: output, shape index: {}]  }
   0x1   :  { %v20_v0 = vld [vmem:[%s303_s1 + $0x8] sm:$0x1]  ;;  %v19_v1 = vld [vmem:[%s303_s1] sm:$0xff]  ;;  %v110_v3 = vld [vmem:[%s305_s2 + $0x18] sm:$0xff] }
   0x2   :  { %v17_v2 = vld [vmem:[%s304_s0] sm:$0xff]  ;;  %225 = vmatprep.subr.msk.mxu0 %vm28_vm0, %v20_v0  ;;  %v109_v4 = vld [vmem:[%s305_s2 + $0x10] sm:$0xff]  ;;  %v18_v5 = vld [vmem:[%s304_s0 + $0x8] sm:$0x1]  ;;  %232 = vmatprep.subr.mxu1 %v110_v3 }
   0x3   :  { %229 = vmatprep.mubr.msk.f32.mxu0 %vm21_vm1, %v17_v2  ;;  %226 = vmatpush3.msk.msra.mxu0 %vm28_vm0, %v20_v0  ;;  %v108_v6 = vld [vmem:[%s305_s2 + $0x8] sm:$0xff]  ;;  %v107_v7 = vld [vmem:[%s305_s2] sm:$0xff] }
   0x4   :  { %227 = vmatprep.subr.mxu0 %v19_v1  ;;  %233 = vmatpush3.msra.mxu1 %v110_v3  ;;  %v212_v10 = vld [vmem:[%s306_s3] ss:$0 sm:$0xff] }
   0x5   :  { %228 = vmatpush3.msra.mxu0 %v19_v1  ;;  %234 = vmatprep.subr.mxu1 %v109_v4 }
   0x6   :  { %230 = vmatmul.mubr.msk.f32.vlgmr.msra.gmra.mxu0 %vm21_vm1, %v18_v5  ;;  %235 = vmatpush3.msra.mxu1 %v109_v4 }
   0x7   :  { %236 = vmatprep.subr.mxu1 %v108_v6 }
   0x8   :  { %237 = vmatpush3.msra.mxu1 %v108_v6 }
   0x9   :  { %238 = vmatprep.subr.mxu1 %v107_v7 }
   0xa   :  { %239 = vmatpush3.msra.mxu1 %v107_v7 }
  0xc6   :  { %v231_v8 = vpop.f32.mrf.mxu0 }
  0xc8   :  { %v98_v9 = vpop.f32.mrf.mxu0 }
  0xc9   :  { %240 = vmatprep.mubr.msk.f32.mxu1 %vm118_vm2, %v98_v9 }
  0xca   :  { %241 = vmatmul.mubr.msk.f32.vlgmr.msra.gmra.mxu1 %vm118_vm2, %v231_v8 }
 0x18a   :  { %v242_v11 = vpop.f32.mrf.mxu1 }
 0x18b   :  { %v197_v12 = vadd.f32 %v242_v11, %v212_v10 }
 0x18c   :  { %v191_v13 = vpop.f32.mrf.mxu1 }
 0x18d   :  { %v201_v14 = vmax.f32 %v197_v12, 0.0  ;;  %v192_v15 = vadd.f32 %v212_v10, %v191_v13 }
 0x18f   :  { %204 = vst.msk [vmem:[%s307_s4 + $0x8] sm:$0x1] %vm203_vm3, %v201_v14  ;;  %v200_v16 = vmax.f32 %v192_v15, 0.0 }
 0x191   :  { %202 = vst.msk [vmem:[%s307_s4] sm:$0xff] %vm118_vm2, %v200_v16 }

// kernel: _lambda_.13
= control target key start
LH: loop header
LB: loop body
LE: loop exit
PB: predicated region body
PF: predicated region fallthrough
CT: control target
= control target key end

     0   :  { %vm31_vm0 = vcmask 1045504   ;;  %vm24_vm1 = vcmask 113664   ;;  %vm121_vm2 = vcmask 261120   ;;  %s324_s1 = inlined_call_operand.vmem [shape: f32[14,32], index: 1, kind: input, shape index: {}]   ;;  %s325_s0 = inlined_call_operand.vmem [shape: f32[16,14], index: 0, kind: input, shape index: {}]   ;;  %s326_s2 = inlined_call_operand.vmem [shape: f32[32,32], index: 2, kind: input, shape index: {}]   ;;  %s327_s3 = inlined_call_operand.vmem [shape: f32[1,32], index: 3, kind: input, shape index: {}]   ;;  %s328_s4 = inlined_call_operand.vmem [shape: f32[16,32], index: 4, kind: input, shape index: {}]   ;;  %s329_s5 = inlined_call_operand.vmem [shape: f32[16,32], index: 5, kind: output, shape index: {}]  }
   0x1   :  { %v23_v0 = vld [vmem:[%s324_s1 + $0x8] sm:$0x3f]  ;;  %v22_v1 = vld [vmem:[%s324_s1] sm:$0xff]  ;;  %v113_v3 = vld [vmem:[%s326_s2 + $0x18] sm:$0xff] }
   0x2   :  { %v20_v2 = vld [vmem:[%s325_s0] sm:$0xff]  ;;  %231 = vmatprep.subr.msk.mxu0 %vm31_vm0, %v23_v0  ;;  %v112_v4 = vld [vmem:[%s326_s2 + $0x10] sm:$0xff]  ;;  %v21_v5 = vld [vmem:[%s325_s0 + $0x8] sm:$0xff]  ;;  %238 = vmatprep.subr.mxu1 %v113_v3 }
   0x3   :  { %235 = vmatprep.mubr.msk.f32.mxu0 %vm24_vm1, %v20_v2  ;;  %232 = vmatpush3.msk.msra.mxu0 %vm31_vm0, %v23_v0  ;;  %v111_v6 = vld [vmem:[%s326_s2 + $0x8] sm:$0xff]  ;;  %v110_v7 = vld [vmem:[%s326_s2] sm:$0xff] }
   0x4   :  { %233 = vmatprep.subr.mxu0 %v22_v1  ;;  %239 = vmatpush3.msra.mxu1 %v113_v3  ;;  %v218_v10 = vld [vmem:[%s327_s3] ss:$0 sm:$0xff]  ;;  %v206_v13 = vld [vmem:[%s328_s4 + $0x8] sm:$0xff] }
   0x5   :  { %234 = vmatpush3.msra.mxu0 %v22_v1  ;;  %240 = vmatprep.subr.mxu1 %v112_v4  ;;  %v205_v17 = vld [vmem:[%s328_s4] sm:$0xff] }
   0x6   :  { %236 = vmatmul.mubr.msk.f32.vlgmr.msra.gmra.mxu0 %vm24_vm1, %v21_v5  ;;  %241 = vmatpush3.msra.mxu1 %v112_v4 }
   0x7   :  { %242 = vmatprep.subr.mxu1 %v111_v6 }
   0x8   :  { %243 = vmatpush3.msra.mxu1 %v111_v6 }
   0x9   :  { %244 = vmatprep.subr.mxu1 %v110_v7 }
   0xa   :  { %245 = vmatpush3.msra.mxu1 %v110_v7 }
  0xc6   :  { %v237_v8 = vpop.f32.mrf.mxu0 }
  0xc8   :  { %v101_v9 = vpop.f32.mrf.mxu0 }
  0xc9   :  { %246 = vmatprep.mubr.msk.f32.mxu1 %vm121_vm2, %v101_v9 }
  0xca   :  { %247 = vmatmul.mubr.msk.f32.vlgmr.msra.gmra.mxu1 %vm121_vm2, %v237_v8 }
 0x18a   :  { %v248_v11 = vpop.f32.mrf.mxu1 }
 0x18b   :  { %v200_v12 = vadd.f32 %v248_v11, %v218_v10 }
 0x18c   :  { %v194_v14 = vpop.f32.mrf.mxu1 }
 0x18d   :  { %v204_v15 = vmax.f32 %v200_v12, 0.0  ;;  %v195_v16 = vadd.f32 %v218_v10, %v194_v14 }
 0x18f   :  { %v208_v18 = vadd.f32 %v206_v13, %v204_v15  ;;  %v203_v19 = vmax.f32 %v195_v16, 0.0 }
 0x191   :  { %210 = vst.msk [vmem:[%s329_s5 + $0x8] sm:$0xff] %vm121_vm2, %v208_v18  ;;  %v207_v20 = vadd.f32 %v205_v17, %v203_v19 }
 0x193   :  { %209 = vst.msk [vmem:[%s329_s5] sm:$0xff] %vm121_vm2, %v207_v20 }

</bundles_post_ra>
